<compile_context>
chip_gen: v7x
topology: tpu7x:2x2x1
jax: 0.10.0
libtpu: 0.0.40
codegen_flags: <defaults>
</compile_context>

<pallas_src>
import functools

import jax
import jax.numpy as jnp
from jax.experimental import pallas as pl
from jax.experimental.pallas import tpu as pltpu

_LANE = 128
_MAX_BLOCK_ROWS = 2048        # (2048,128) f32 block = 1 MiB; 2 inputs x 2 bufs <= 4 MiB VMEM
_PAD_LOGIT = -1.0e4           # sigmoid(-1e4) == 0.0 in f32 -> padding is neutral


def _round_up(x, m):
    return ((x + m - 1) // m) * m


def _tversky_kernel(x_ref, t_ref, o_ref, tp_acc, sx_acc, st_acc,
                    *, alpha, beta, smooth):
    i = pl.program_id(0)

    @pl.when(i == 0)
    def _():
        tp_acc[...] = jnp.zeros_like(tp_acc)
        sx_acc[...] = jnp.zeros_like(sx_acc)
        st_acc[...] = jnp.zeros_like(st_acc)

    xf = x_ref[...].astype(jnp.float32)
    tf = t_ref[...].astype(jnp.float32)
    # Sigmoid (EUP exp + divide). Padded logits of -1e4 give exactly 0.
    x = 1.0 / (1.0 + jnp.exp(-xf))

    br = x.shape[0]
    x3 = x.reshape(br // 8, 8, _LANE)
    t3 = tf.reshape(br // 8, 8, _LANE)

    # Steady state: pure VPU elementwise adds into (8,128) vreg accumulators.
    tp_acc[...] += jnp.sum(x3 * t3, axis=0)
    sx_acc[...] += jnp.sum(x3, axis=0)
    st_acc[...] += jnp.sum(t3, axis=0)

    @pl.when(i == pl.num_programs(0) - 1)
    def _():
        tp = jnp.sum(tp_acc[...])
        sx = jnp.sum(sx_acc[...])
        st = jnp.sum(st_acc[...])
        fp = sx - tp              # sum((1 - t) * x)
        fn = st - tp              # sum(t * (1 - x))
        tversky = (tp + smooth) / (tp + alpha * fp + beta * fn + smooth)
        o_ref[0, 0] = 1.0 - tversky


def tversky_loss(inputs, targets, *, alpha=0.5, beta=0.5, smooth=1.0):
    """JAX/Pallas equivalent of TverskyLoss.forward(inputs, targets, smooth=1)."""
    x = inputs.reshape(-1)     # keep native dtype; cast happens in-kernel
    t = targets.reshape(-1)
    n = x.shape[0]

    rows_needed = pl.cdiv(n, _LANE)
    if rows_needed <= _MAX_BLOCK_ROWS:
        block_rows = _round_up(rows_needed, 8)   # single block / single grid step
        num_blocks = 1
    else:
        block_rows = _MAX_BLOCK_ROWS
        num_blocks = pl.cdiv(rows_needed, block_rows)
    padded_rows = block_rows * num_blocks
    pad = padded_rows * _LANE - n
    if pad:
        # Pad logits with a large negative (sigmoid -> 0) and targets with 0,
        # so padded elements contribute nothing to TP / sum(x) / sum(t).
        x = jnp.pad(x, (0, pad), constant_values=_PAD_LOGIT)
        t = jnp.pad(t, (0, pad), constant_values=0)

    x2 = x.reshape(padded_rows, _LANE)
    t2 = t.reshape(padded_rows, _LANE)

    kernel = functools.partial(
        _tversky_kernel, alpha=float(alpha), beta=float(beta), smooth=float(smooth))

    out = pl.pallas_call(
        kernel,
        out_shape=jax.ShapeDtypeStruct((1, 1), jnp.float32),
        grid_spec=pltpu.PrefetchScalarGridSpec(
            num_scalar_prefetch=0,
            grid=(num_blocks,),
            in_specs=[
                pl.BlockSpec((block_rows, _LANE), lambda i: (i, 0)),
                pl.BlockSpec((block_rows, _LANE), lambda i: (i, 0)),
            ],
            out_specs=pl.BlockSpec(memory_space=pltpu.SMEM),
            scratch_shapes=[
                pltpu.VMEM((8, _LANE), jnp.float32),  # TP partials
                pltpu.VMEM((8, _LANE), jnp.float32),  # sum(sigmoid(x)) partials
                pltpu.VMEM((8, _LANE), jnp.float32),  # sum(t) partials
            ],
        ),
        # Accumulator is carried across the grid -> axis must be "arbitrary".
        # TODO(synk): a two-stage reduction (per-block partial sums + tiny
        # epilogue) would allow "parallel" across v7x's two TensorCores.
        compiler_params=pltpu.CompilerParams(
            dimension_semantics=("arbitrary",)),
    )(x2, t2)
    return out[0, 0]


def _reference(inputs, targets, alpha=0.5, beta=0.5, smooth=1.0):
    x = jax.nn.sigmoid(inputs.reshape(-1).astype(jnp.float32))
    t = targets.reshape(-1).astype(jnp.float32)
    tp = jnp.sum(x * t)
    fp = jnp.sum((1.0 - t) * x)
    fn = jnp.sum(t * (1.0 - x))
    tversky = (tp + smooth) / (tp + alpha * fp + beta * fn + smooth)
    return 1.0 - tversky


if __name__ == "__main__":
    key = jax.random.PRNGKey(0)
    k1, k2 = jax.random.split(key)
    # Segmentation-style NCHW logits / binary targets: [2, 4, 16, 16]
    inputs = jax.random.normal(k1, (2, 4, 16, 16), dtype=jnp.float32)
    targets = (jax.random.uniform(k2, (2, 4, 16, 16)) > 0.5).astype(jnp.float32)

    out = tversky_loss(inputs, targets)
    out = jax.block_until_ready(out)

    ref = _reference(inputs, targets)
    assert jnp.allclose(out, ref, atol=1e-5, rtol=1e-5), (out, ref)
    print("KERNEL_OK")
</pallas_src>

<mosaic_0001>
module attributes {stable_mosaic.version = 11 : i64} {
  func.func @_tversky_kernel(%arg0: i32, %arg1: memref<16x128xf32, #tpu.memory_space<vmem>>, %arg2: memref<16x128xf32, #tpu.memory_space<vmem>>, %arg3: memref<1x1xf32, #tpu.memory_space<smem>>, %arg4: memref<8x128xf32, #tpu.memory_space<vmem>>, %arg5: memref<8x128xf32, #tpu.memory_space<vmem>>, %arg6: memref<8x128xf32, #tpu.memory_space<vmem>>) attributes {dimension_semantics = [#tpu.dimension_semantics<arbitrary>], iteration_bounds = array<i64: 1>, scalar_prefetch = 0 : i64, scratch_operands = 3 : i64, tpu.core_type = #tpu.core_type<tc>, window_params = [{transform_indices = @transform_0, window_bounds = array<i64: 16, 128>}, {transform_indices = @transform_1, window_bounds = array<i64: 16, 128>}, {transform_indices = @transform_2, window_bounds = array<i64: 1, 1>}]} {
    %c0_i32 = arith.constant 0 : i32
    %0 = arith.cmpi eq, %arg0, %c0_i32 : i32
    %1 = arith.extui %0 : i1 to i32
    %c0_i32_0 = arith.constant 0 : i32
    %2 = arith.cmpi ne, %1, %c0_i32_0 : i32
    scf.if %2 {
      %cst_23 = arith.constant 0.000000e+00 : f32
      %30 = vector.broadcast %cst_23 : f32 to vector<8x128xf32>
      %c0_24 = arith.constant 0 : index
      %c0_25 = arith.constant 0 : index
      %31 = vector.load %arg4[%c0_24, %c0_25] : memref<8x128xf32, #tpu.memory_space<vmem>>, vector<8x128xf32>
      tpu.vector_store %arg4[%c0_24, %c0_25], %30 {strides = array<i32>} : memref<8x128xf32, #tpu.memory_space<vmem>>, vector<8x128xf32>,
      %cst_26 = arith.constant 0.000000e+00 : f32
      %32 = vector.broadcast %cst_26 : f32 to vector<8x128xf32>
      %c0_27 = arith.constant 0 : index
      %c0_28 = arith.constant 0 : index
      %33 = vector.load %arg5[%c0_27, %c0_28] : memref<8x128xf32, #tpu.memory_space<vmem>>, vector<8x128xf32>
      tpu.vector_store %arg5[%c0_27, %c0_28], %32 {strides = array<i32>} : memref<8x128xf32, #tpu.memory_space<vmem>>, vector<8x128xf32>,
      %cst_29 = arith.constant 0.000000e+00 : f32
      %34 = vector.broadcast %cst_29 : f32 to vector<8x128xf32>
      %c0_30 = arith.constant 0 : index
      %c0_31 = arith.constant 0 : index
      %35 = vector.load %arg6[%c0_30, %c0_31] : memref<8x128xf32, #tpu.memory_space<vmem>>, vector<8x128xf32>
      tpu.vector_store %arg6[%c0_30, %c0_31], %34 {strides = array<i32>} : memref<8x128xf32, #tpu.memory_space<vmem>>, vector<8x128xf32>,
    } else {
    }
    %c0 = arith.constant 0 : index
    %c0_1 = arith.constant 0 : index
    %3 = vector.load %arg1[%c0, %c0_1] : memref<16x128xf32, #tpu.memory_space<vmem>>, vector<16x128xf32>
    %c0_2 = arith.constant 0 : index
    %c0_3 = arith.constant 0 : index
    %4 = vector.load %arg2[%c0_2, %c0_3] : memref<16x128xf32, #tpu.memory_space<vmem>>, vector<16x128xf32>
    %cst = arith.constant 0.000000e+00 : f32
    %5 = vector.broadcast %cst : f32 to vector<16x128xf32>
    %6 = arith.subf %5, %3 : vector<16x128xf32>
    %7 = math.exp %6 : vector<16x128xf32>
    %cst_4 = arith.constant 1.000000e+00 : f32
    %8 = vector.broadcast %cst_4 : f32 to vector<16x128xf32>
    %9 = arith.addf %8, %7 : vector<16x128xf32>
    %cst_5 = arith.constant 1.000000e+00 : f32
    %10 = vector.broadcast %cst_5 : f32 to vector<16x128xf32>
    %11 = arith.divf %10, %9 : vector<16x128xf32>
    %12 = vector.shape_cast %11 : vector<16x128xf32> to vector<2x8x128xf32>
    %13 = vector.shape_cast %4 : vector<16x128xf32> to vector<2x8x128xf32>
    %c0_6 = arith.constant 0 : index
    %c0_7 = arith.constant 0 : index
    %14 = vector.load %arg4[%c0_6, %c0_7] : memref<8x128xf32, #tpu.memory_space<vmem>>, vector<8x128xf32>
    %15 = arith.mulf %12, %13 : vector<2x8x128xf32>
    %cst_8 = arith.constant dense<0.000000e+00> : vector<8x128xf32>
    %16 = vector.multi_reduction <add>, %15, %cst_8 [0] : vector<2x8x128xf32> to vector<8x128xf32>
    %17 = arith.addf %14, %16 : vector<8x128xf32>
    %c0_9 = arith.constant 0 : index
    %c0_10 = arith.constant 0 : index
    %18 = vector.load %arg4[%c0_9, %c0_10] : memref<8x128xf32, #tpu.memory_space<vmem>>, vector<8x128xf32>
    tpu.vector_store %arg4[%c0_9, %c0_10], %17 {strides = array<i32>} : memref<8x128xf32, #tpu.memory_space<vmem>>, vector<8x128xf32>,
    %c0_11 = arith.constant 0 : index
    %c0_12 = arith.constant 0 : index
    %19 = vector.load %arg5[%c0_11, %c0_12] : memref<8x128xf32, #tpu.memory_space<vmem>>, vector<8x128xf32>
    %cst_13 = arith.constant dense<0.000000e+00> : vector<8x128xf32>
    %20 = vector.multi_reduction <add>, %12, %cst_13 [0] : vector<2x8x128xf32> to vector<8x128xf32>
    %21 = arith.addf %19, %20 : vector<8x128xf32>
    %c0_14 = arith.constant 0 : index
    %c0_15 = arith.constant 0 : index
    %22 = vector.load %arg5[%c0_14, %c0_15] : memref<8x128xf32, #tpu.memory_space<vmem>>, vector<8x128xf32>
    tpu.vector_store %arg5[%c0_14, %c0_15], %21 {strides = array<i32>} : memref<8x128xf32, #tpu.memory_space<vmem>>, vector<8x128xf32>,
    %c0_16 = arith.constant 0 : index
    %c0_17 = arith.constant 0 : index
    %23 = vector.load %arg6[%c0_16, %c0_17] : memref<8x128xf32, #tpu.memory_space<vmem>>, vector<8x128xf32>
    %cst_18 = arith.constant dense<0.000000e+00> : vector<8x128xf32>
    %24 = vector.multi_reduction <add>, %13, %cst_18 [0] : vector<2x8x128xf32> to vector<8x128xf32>
    %25 = arith.addf %23, %24 : vector<8x128xf32>
    %c0_19 = arith.constant 0 : index
    %c0_20 = arith.constant 0 : index
    %26 = vector.load %arg6[%c0_19, %c0_20] : memref<8x128xf32, #tpu.memory_space<vmem>>, vector<8x128xf32>
    tpu.vector_store %arg6[%c0_19, %c0_20], %25 {strides = array<i32>} : memref<8x128xf32, #tpu.memory_space<vmem>>, vector<8x128xf32>,
    %c0_i32_21 = arith.constant 0 : i32
    %27 = arith.cmpi eq, %arg0, %c0_i32_21 : i32
    %28 = arith.extui %27 : i1 to i32
    %c0_i32_22 = arith.constant 0 : i32
    %29 = arith.cmpi ne, %28, %c0_i32_22 : i32
    scf.if %29 {
      %c0_23 = arith.constant 0 : index
      %c0_24 = arith.constant 0 : index
      %30 = vector.load %arg4[%c0_23, %c0_24] : memref<8x128xf32, #tpu.memory_space<vmem>>, vector<8x128xf32>
      %31 = vector.shape_cast %30 : vector<8x128xf32> to vector<1x8x128xf32>
      %cst_25 = arith.constant dense<0.000000e+00> : vector<1xf32>
      %32 = vector.multi_reduction <add>, %31, %cst_25 [1, 2] : vector<1x8x128xf32> to vector<1xf32>
      %33 = vector.shape_cast %32 : vector<1xf32> to vector<1x1x1xf32>
      %34 = vector.extract %33[0, 0, 0] : f32 from vector<1x1x1xf32>
      %c0_26 = arith.constant 0 : index
      %c0_27 = arith.constant 0 : index
      %35 = vector.load %arg5[%c0_26, %c0_27] : memref<8x128xf32, #tpu.memory_space<vmem>>, vector<8x128xf32>
      %36 = vector.shape_cast %35 : vector<8x128xf32> to vector<1x8x128xf32>
      %cst_28 = arith.constant dense<0.000000e+00> : vector<1xf32>
      %37 = vector.multi_reduction <add>, %36, %cst_28 [1, 2] : vector<1x8x128xf32> to vector<1xf32>
      %38 = vector.shape_cast %37 : vector<1xf32> to vector<1x1x1xf32>
      %39 = vector.extract %38[0, 0, 0] : f32 from vector<1x1x1xf32>
      %c0_29 = arith.constant 0 : index
      %c0_30 = arith.constant 0 : index
      %40 = vector.load %arg6[%c0_29, %c0_30] : memref<8x128xf32, #tpu.memory_space<vmem>>, vector<8x128xf32>
      %41 = vector.shape_cast %40 : vector<8x128xf32> to vector<1x8x128xf32>
      %cst_31 = arith.constant dense<0.000000e+00> : vector<1xf32>
      %42 = vector.multi_reduction <add>, %41, %cst_31 [1, 2] : vector<1x8x128xf32> to vector<1xf32>
      %43 = vector.shape_cast %42 : vector<1xf32> to vector<1x1x1xf32>
      %44 = vector.extract %43[0, 0, 0] : f32 from vector<1x1x1xf32>
      %45 = arith.subf %39, %34 : f32
      %46 = arith.subf %44, %34 : f32
      %cst_32 = arith.constant 1.000000e+00 : f32
      %47 = arith.addf %34, %cst_32 : f32
      %cst_33 = arith.constant 5.000000e-01 : f32
      %48 = arith.mulf %cst_33, %45 : f32
      %49 = arith.addf %34, %48 : f32
      %cst_34 = arith.constant 5.000000e-01 : f32
      %50 = arith.mulf %cst_34, %46 : f32
      %51 = arith.addf %49, %50 : f32
      %cst_35 = arith.constant 1.000000e+00 : f32
      %52 = arith.addf %51, %cst_35 : f32
      %53 = arith.divf %47, %52 : f32
      %cst_36 = arith.constant 1.000000e+00 : f32
      %54 = arith.subf %cst_36, %53 : f32
      %c0_37 = arith.constant 0 : index
      %c0_38 = arith.constant 0 : index
      %55 = memref.load %arg3[%c0_37, %c0_38] : memref<1x1xf32, #tpu.memory_space<smem>>
      memref.store %54, %arg3[%c0_37, %c0_38] : memref<1x1xf32, #tpu.memory_space<smem>>
    } else {
    }
    return
  }
  func.func @transform_0(%arg0: i32) -> (i32, i32) {
    %c0_i32 = arith.constant 0 : i32
    %c0_i32_0 = arith.constant 0 : i32
    return %arg0, %c0_i32 : i32, i32
  }
  func.func @transform_1(%arg0: i32) -> (i32, i32) {
    %c0_i32 = arith.constant 0 : i32
    %c0_i32_0 = arith.constant 0 : i32
    return %arg0, %c0_i32 : i32, i32
  }
  func.func @transform_2(%arg0: i32) -> (i32, i32) {
    %c0_i32 = arith.constant 0 : i32
    %c0_i32_0 = arith.constant 0 : i32
    %c0_i32_1 = arith.constant 0 : i32
    return %c0_i32, %c0_i32_0 : i32, i32
  }
}

</mosaic_0001>

<bundles_post_ra>
// kernel: tpu_custom_call.1
= control target key start
LH: loop header
LB: loop body
LE: loop exit
PB: predicated region body
PF: predicated region fallthrough
CT: control target
= control target key end

     0   :  { %7 = vsyncpa [#allocation6], 0  ;;  %s279_s0 = inlined_call_operand.hbm [shape: f32[16,128], index: 0, kind: input, shape index: {}]   ;;  %s280_s1 = inlined_call_operand.hbm [shape: f32[16,128], index: 1, kind: input, shape index: {}]   ;;  %s281_s2 = inlined_call_operand.hbm [shape: f32[1,1], index: 2, kind: output, shape index: {}]  }
   0x1   :  { %8 = vsyncpa [#allocation9], 0 }
   0x2   :  { %9 = vsyncpa [#allocation7], 0  ;;  %s223_s9 = smov [#allocation5]   ;;  %s163_s13 = scalar_lea.hbm %s279_s0, 256 }
   0x3   :  { %s15_s10 = sshll.u32 %s223_s9, 4  ;;  %p164_p0 = scmp.ne.s32.totalorder %s279_s0, %s163_s13  ;;  %s16_s10 = int_to_ptr.vmem [resolvable:$true] %s15_s10 }
   0x4   :  { %p167_p1 = scmp.lt.u32.totalorder %s163_s13, %s279_s0 }
   0x6   :  { %p169_p2 = pnand %p167_p1, %p164_p0 }
   0x8   :  { %172 = shalt.err (!%p169_p2)
}
   0x9   :  { %s173_s18 = scalar_lea.vmem %s16_s10, 256  ;;  %p178_p4 = scmp.lt.s32.totalorder %s16_s10, %s16_s10 }
   0xa   :  { %p174_p3 = scmp.ne.s32.totalorder %s16_s10, %s173_s18  ;;  %p179_p5 = scmp.lt.s32.totalorder %s173_s18, %s173_s18 }
   0xc   :  { %p180_p6 = por %p179_p5, %p178_p4 }
   0xe   :  { %p181_p7 = pnand %p180_p6, %p174_p3 }
  0x10   :  { %184 = shalt.err (!%p181_p7)
}
  0x11   :  { %s224_s19 = smov 128   ;;  %s225_s20 = smov 8  }
  0x12   :  { %21 = dma.hbm_to_vmem [thread:$0]  %s279_s0, 256, %s16_s10, [#allocation6], %s224_s19, %s224_s19, %s225_s20  }
  0x13   :  { %s226_s23 = smov [#allocation8]   ;;  %s185_s27 = scalar_lea.hbm %s280_s1, 256 }
  0x14   :  { %s27_s24 = sshll.u32 %s226_s23, 4  ;;  %p186_p8 = scmp.ne.s32.totalorder %s280_s1, %s185_s27  ;;  %s28_s24 = int_to_ptr.vmem [resolvable:$true] %s27_s24 }
  0x15   :  { %p189_p9 = scmp.lt.u32.totalorder %s185_s27, %s280_s1 }
  0x17   :  { %p191_p10 = pnand %p189_p9, %p186_p8 }
  0x19   :  { %194 = shalt.err (!%p191_p10)
}
  0x1a   :  { %s195_s4 = scalar_lea.vmem %s28_s24, 256  ;;  %p200_p12 = scmp.lt.s32.totalorder %s28_s24, %s28_s24 }
  0x1b   :  { %p196_p11 = scmp.ne.s32.totalorder %s28_s24, %s195_s4  ;;  %p201_p13 = scmp.lt.s32.totalorder %s195_s4, %s195_s4 }
  0x1d   :  { %p202_p0 = por %p201_p13, %p200_p12 }
  0x1f   :  { %p203_p1 = pnand %p202_p0, %p196_p11 }
  0x21   :  { %206 = shalt.err (!%p203_p1)
}
  0x22   :  { %33 = dma.hbm_to_vmem [thread:$0]  %s280_s1, 256, %s28_s24, [#allocation9], %s224_s19, %s224_s19, %s225_s20  }
  0x23   :  { %217 = dma.done.wait [#allocation6], 256  }
  0x24   :  { %218 = vsyncadd [#allocation6], 4294967040 }
  0x25   :  { %219 = dma.done.wait [#allocation9], 256  }
  0x26   :  { %220 = vsyncadd [#allocation9], 4294967040  ;;  %v49_v0 = vld [vmem:[#allocation8] sm:$0xff]  ;;  %v50_v1 = vld [vmem:[#allocation8 + $0x8] sm:$0xff]  ;;  %s207_s21 = scalar_lea.hbm %s281_s2, 16 }
  0x27   :  { %v47_v2 = vld [vmem:[#allocation5] sm:$0xff]  ;;  %v74_v3 = vadd.f32 %v50_v1, %v49_v0  ;;  %v48_v4 = vld [vmem:[#allocation5 + $0x8] sm:$0xff]  ;;  %p208_p2 = scmp.ne.s32.totalorder %s281_s2, %s207_s21  ;;  %p211_p3 = scmp.lt.u32.totalorder %s207_s21, %s281_s2 }
  0x28   :  { %v51_v5 = vsub.f32 0.0, %v47_v2  ;;  %v52_v6 = vsub.f32 0.0, %v48_v4 }
  0x29   :  { %101 = vadd.xlane.f32.xlu1 %v74_v3  ;;  %p213_p4 = pnand %p211_p3, %p208_p2 }
  0x2a   :  { %v53_v7 = vmul.f32 1.442695, %v51_v5  ;;  %v55_v8 = vmul.f32 1.442695, %v52_v6 }
  0x2c   :  { %153 = vpow2.f32 %v53_v7 }
  0x2d   :  { %155 = vpow2.f32 %v55_v8 }
  0x36   :  { %v154_v9 = vpop.eup %153 }
  0x37   :  { %v156_v10 = vpop.eup %155  ;;  %v57_v11 = vadd.f32 1.0, %v154_v9 }
  0x38   :  { %v58_v12 = vadd.f32 1.0, %v156_v10 }
  0x39   :  { %157 = vrcp.f32 %v57_v11 }
  0x3a   :  { %159 = vrcp.f32 %v58_v12 }
  0x43   :  { %v158_v13 = vpop.eup %157 }
  0x44   :  { %v160_v14 = vpop.eup %159  ;;  %v64_v15 = vmul.f32 %v158_v13, %v49_v0 }
  0x45   :  { %v65_v16 = vmul.f32 %v160_v14, %v50_v1  ;;  %v70_v18 = vadd.f32 %v160_v14, %v158_v13 }
  0x47   :  { %v66_v17 = vadd.f32 %v65_v16, %v64_v15 }
  0x49   :  { %81 = vadd.xlane.f32.xlu0 %v66_v17 }
  0x4d   :  { %91 = vadd.xlane.f32.xlu0 %v70_v18 }
  0xb6   :  { %v102_v19 = vpop.xlane.xlu1 %101 }
  0xb7   :  { %v103_v20 = vrot.slane %v102_v19, 4 }
  0xb9   :  { %v104_v21 = vadd.f32 %v103_v20, %v102_v19 }
  0xbb   :  { %v105_v25 = vrot.slane %v104_v21, 2 }
  0xbd   :  { %v106_v31 = vadd.f32 %v105_v25, %v104_v21 }
  0xbf   :  { %v107_v36 = vrot.slane %v106_v31, 1 }
  0xc1   :  { %v108_v39 = vadd.f32 %v107_v36, %v106_v31 }
  0xd6   :  { %v82_v22 = vpop.xlane.xlu0 %81 }
  0xd7   :  { %v83_v23 = vrot.slane %v82_v22, 4 }
  0xd9   :  { %v84_v24 = vadd.f32 %v83_v23, %v82_v22 }
  0xda   :  { %v92_v26 = vpop.xlane.xlu0 %91 }
  0xdb   :  { %v85_v27 = vrot.slane %v84_v24, 2  ;;  %v93_v28 = vrot.slane %v92_v26, 4 }
  0xdd   :  { %v94_v29 = vadd.f32 %v93_v28, %v92_v26  ;;  %v86_v30 = vadd.f32 %v85_v27, %v84_v24 }
  0xdf   :  { %v95_v32 = vrot.slane %v94_v29, 2  ;;  %v87_v33 = vrot.slane %v86_v30, 1 }
  0xe1   :  { %v96_v34 = vadd.f32 %v95_v32, %v94_v29  ;;  %v88_v35 = vadd.f32 %v87_v33, %v86_v30 }
  0xe3   :  { %140 = vpush %v88_v35  ;;  %v97_v37 = vrot.slane %v96_v34, 1 }
  0xe5   :  { %v98_v38 = vadd.f32 %v97_v37, %v96_v34 }
  0xe7   :  { %142 = vpush %v98_v38 }
  0xe8   :  { %144 = vpush %v108_v39 }
 0x114   :  { %s141_s1 = spop %140 }
 0x115   :  { %s112_s15 = sadd.f32 1.0, %s141_s1 }
 0x118   :  { %s143_s6 = spop %142 }
 0x119   :  { %s110_s7 = ssub.f32 %s143_s6, %s141_s1  ;;  %s145_s8 = spop %144 }
 0x11a   :  { %s111_s9 = ssub.f32 %s145_s8, %s141_s1 }
 0x11b   :  { %s113_s10 = smul.f32 0.5, %s110_s7 }
 0x11c   :  { %s115_s12 = smul.f32 0.5, %s111_s9 }
 0x11d   :  { %s114_s11 = sadd.f32 %s141_s1, %s113_s10 }
 0x11f   :  { %s116_s13 = sadd.f32 %s115_s12, %s114_s11 }
 0x121   :  { %s117_s14 = sadd.f32 1.0, %s116_s13 }
 0x123   :  { %v118_v40 = vstv %s117_s14 }
 0x124   :  { %161 = vrcp.f32 %v118_v40 }
 0x12e   :  { %v162_v41 = vpop.eup %161 }
 0x12f   :  { %146 = vpush %v162_v41 }
 0x160   :  { %s147_s16 = spop %146 }
 0x161   :  { %s121_s17 = smul.f32 %s147_s16, %s112_s15 }
 0x163   :  { %s122_s18 = ssub.f32 1.0, %s121_s17 }
 0x165   :  { %124 = sst [smem:[#allocation10]] %s122_s18 }
 0x166   :  { %216 = shalt.err (!%p213_p4)
}
 0x167   :  { %s227_s26 = smov [#allocation10]  }
 0x168   :  { %132 = dma.smem_to_hbm %s227_s26, 16, %s281_s2, [#allocation7]  }
 0x169   :  { %221 = dma.done.wait [#allocation7], 16  }
 0x16a   :  { %222 = vsyncadd [#allocation7], 4294967280 }
 0x16b   :  { %136 = sfence }
 0x16c   :  { %137 = vsyncpa [#allocation6], 1 }
 0x16d   :  { %138 = vsyncpa [#allocation9], 1 }
 0x16e   :  { %139 = vsyncpa [#allocation7], 1 }

</bundles_post_ra>
